<compile_context>
chip_gen: v7x
topology: tpu7x:2x2x1
jax: 0.10.0
libtpu: 0.0.40
codegen_flags: <defaults>
</compile_context>

<pallas_src>
import functools

import jax
import jax.numpy as jnp
from jax.experimental import pallas as pl
from jax.experimental.pallas import tpu as pltpu


def _round_up(x, m):
    return ((x + m - 1) // m) * m


_VMEM_LIMIT = 48 * 1024 * 1024   # stay under v7x's 64 MiB physical VMEM


# ----------------------------------------------------------------------------
# Fused GEMM: out = act(X @ W + bias), tiled over (M, N, K).
# bf16 operands, f32 accumulation + epilogue, bf16 output.
# (Used for ConvTranspose2d(k=2, s=2), which is a pure GEMM -- no im2col.)
# ----------------------------------------------------------------------------
def _gemm_bias_act_kernel(x_ref, w_ref, b_ref, o_ref, acc_ref, *, relu):
    k = pl.program_id(2)

    @pl.when(k == 0)
    def _():
        acc_ref[...] = jnp.zeros_like(acc_ref)

    acc_ref[...] += jnp.dot(x_ref[...], w_ref[...],
                            preferred_element_type=jnp.float32)

    @pl.when(k == pl.num_programs(2) - 1)
    def _():
        y = acc_ref[...] + b_ref[...]            # f32 epilogue
        if relu:
            y = jnp.maximum(y, 0.0)
        o_ref[...] = y.astype(o_ref.dtype)       # bf16 writeback


def gemm_bias_act(x, w, b, relu=False):
    """x: (M, K), w: (K, N), b: (N,). Returns bf16 (M, N) = act(x @ w + b)."""
    M, K = x.shape
    K2, N = w.shape
    assert K == K2, (K, K2)

    xb = x.astype(jnp.bfloat16)
    wb = w.astype(jnp.bfloat16)
    b2 = b.astype(jnp.float32).reshape(1, N)

    # ---- N: lane-dense multiple of 128; TN=256 only when the *true* N is big.
    Np = _round_up(N, 128)
    if Np != N:
        wb = jnp.pad(wb, ((0, 0), (0, Np - N)))
        b2 = jnp.pad(b2, ((0, 0), (0, Np - N)))   # keep padded cols exactly 0
    TN = 256 if (N >= 256 and Np % 256 == 0) else 128

    # ---- K: always pad to a multiple of 128 (aligned MXU pass, clean vld).
    Kp = _round_up(K, 128)
    if Kp != K:
        xb = jnp.pad(xb, ((0, 0), (0, Kp - K)))
        wb = jnp.pad(wb, ((0, Kp - K), (0, 0)))
    if Kp <= 512:
        TK = Kp
    else:
        TK = 512 if Kp % 512 == 0 else (256 if Kp % 256 == 0 else 128)

    # ---- M: small M -> one full-extent block padded only to the bf16 sublane
    # pack (16); large M -> 128-aligned tiles.
    if M <= 1024:
        Mp = _round_up(M, 16)
        TM = Mp
    else:
        TM = None
        for cand in (512, 256, 128):
            if M % cand == 0:
                TM, Mp = cand, M
                break
        if TM is None:
            TM = 256
            Mp = _round_up(M, TM)
    if Mp != M:
        xb = jnp.pad(xb, ((0, Mp - M), (0, 0)))

    grid = (Mp // TM, Np // TN, Kp // TK)
    k_steps = grid[2]

    def stream_spec(shape, imap):
        # Deeper pipelining on streamed operands once the K loop is long.
        if k_steps > 4:
            return pl.BlockSpec(shape, imap, pipeline_mode=pl.Buffered(3))
        return pl.BlockSpec(shape, imap)

    out = pl.pallas_call(
        functools.partial(_gemm_bias_act_kernel, relu=relu),
        out_shape=jax.ShapeDtypeStruct((Mp, Np), jnp.bfloat16),
        grid=grid,
        in_specs=[
            stream_spec((TM, TK), lambda i, j, k: (i, k)),
            stream_spec((TK, TN), lambda i, j, k: (k, j)),
            pl.BlockSpec((1, TN), lambda i, j, k: (0, j)),
        ],
        out_specs=pl.BlockSpec((TM, TN), lambda i, j, k: (i, j)),
        scratch_shapes=[pltpu.VMEM((TM, TN), jnp.float32)],
        compiler_params=pltpu.CompilerParams(
            dimension_semantics=("parallel", "parallel", "arbitrary"),
            vmem_limit_bytes=_VMEM_LIMIT),
    )(xb, wb, b2)

    return out[:M, :N]


# ----------------------------------------------------------------------------
# Fused 3x3 conv (stride 1, pad 0) + bias + ReLU, NO im2col HBM round trip.
# grid = (batch, out_row, cout_tile, kh); the 3 kw taps are accumulated
# in-kernel; kh is the (innermost, "arbitrary") reduction axis.
# ----------------------------------------------------------------------------
def _conv3x3_kernel(x_ref, w_ref, b_ref, o_ref, acc_ref, *, Wo):
    kh = pl.program_id(3)

    @pl.when(kh == 0)
    def _():
        acc_ref[...] = jnp.zeros_like(acc_ref)

    # Sum the three kw taps of this input row, then one accumulator update.
    s = None
    for kw in range(3):                               # static, fully unrolled
        xs = x_ref[0, 0, kw:kw + Wo, :]               # (Wo, Cin)  bf16
        wt = w_ref[0, kw, :, :]                       # (Cin, TC)  bf16
        d = jnp.dot(xs, wt, preferred_element_type=jnp.float32)
        s = d if s is None else s + d
    acc_ref[...] += s

    @pl.when(kh == pl.num_programs(3) - 1)
    def _():
        y = acc_ref[...] + b_ref[...]                 # f32 bias
        y = jnp.maximum(y, 0.0)                       # ReLU
        o_ref[0, 0, :, :] = y.astype(o_ref.dtype)     # bf16 writeback


def conv3x3_bias_relu(x_nhwc, w, b):
    """3x3 conv, stride=1, padding=0 (PyTorch Conv2d(.., 3, 1, 0)) + bias + ReLU."""
    N, H, W, Cin = x_nhwc.shape
    Cout = w.shape[0]
    Ho, Wo = H - 2, W - 2

    xb = x_nhwc.astype(jnp.bfloat16)

    # (Cout, Cin, 3, 3) -> (3, 3, Cin, Cout); pad Cout to a lane-dense 128 multiple.
    Cp = _round_up(Cout, 128)
    wt = jnp.transpose(w, (2, 3, 1, 0)).astype(jnp.bfloat16)
    bt = b.astype(jnp.float32).reshape(1, Cout)
    if Cp != Cout:
        wt = jnp.pad(wt, ((0, 0), (0, 0), (0, 0), (0, Cp - Cout)))
        bt = jnp.pad(bt, ((0, 0), (0, Cp - Cout)))    # padded cols stay exactly 0
    TC = 256 if (Cout >= 256 and Cp % 256 == 0) else 128

    grid = (N, Ho, Cp // TC, 3)
    # TODO(synk): for very large images, additionally tile W / Cin (with a halo)
    #             instead of keeping a full input row per block.

    out = pl.pallas_call(
        functools.partial(_conv3x3_kernel, Wo=Wo),
        out_shape=jax.ShapeDtypeStruct((N, Ho, Wo, Cp), jnp.bfloat16),
        grid=grid,
        in_specs=[
            # One full input image row (with the W halo); H block size is 1 so
            # the kh shift is expressed directly in the block index (ho + kh).
            pl.BlockSpec((1, 1, W, Cin), lambda b_, ho, j, kh: (b_, ho + kh, 0, 0)),
            # Weight slice for this kh (all 3 kw taps, full Cin, one Cout tile).
            pl.BlockSpec((1, 3, Cin, TC), lambda b_, ho, j, kh: (kh, 0, 0, j)),
            pl.BlockSpec((1, TC), lambda b_, ho, j, kh: (0, j)),
        ],
        out_specs=pl.BlockSpec((1, 1, Wo, TC), lambda b_, ho, j, kh: (b_, ho, 0, j)),
        scratch_shapes=[pltpu.VMEM((Wo, TC), jnp.float32)],
        compiler_params=pltpu.CompilerParams(
            dimension_semantics=("parallel", "parallel", "parallel", "arbitrary"),
            vmem_limit_bytes=_VMEM_LIMIT),
    )(xb, wt, bt)

    return out[..., :Cout]


# ----------------------------------------------------------------------------
# Conv wrappers / layout glue (plain JAX; heavy math is in the Pallas kernels)
# ----------------------------------------------------------------------------
def deconv2x2_s2(x_nhwc, w, b):
    """ConvTranspose2d(kernel=2, stride=2).  w: (Cin, Cout, 2, 2) PyTorch layout."""
    N, H, W, Cin = x_nhwc.shape
    Cout = w.shape[1]
    # Each input pixel produces a disjoint 2x2 output block -> pure GEMM.
    wm = jnp.transpose(w, (0, 2, 3, 1)).reshape(Cin, 4 * Cout)   # (Cin, kh*kw*Cout)
    bm = jnp.tile(b, 4)                                          # bias per (kh, kw, co)
    xm = x_nhwc.reshape(N * H * W, Cin)
    out = gemm_bias_act(xm, wm, bm, relu=False)                  # bf16 (N*H*W, 4*Cout)
    out = out.reshape(N, H, W, 2, 2, Cout)                       # interleave in bf16
    out = jnp.transpose(out, (0, 1, 3, 2, 4, 5)).reshape(N, 2 * H, 2 * W, Cout)
    return out


def upsample_bilinear_2x(x_nhwc):
    """nn.UpsamplingBilinear2d(scale_factor=2) (align_corners=True).  Plain-JAX glue."""
    def axis_interp(arr, axis, n_in, n_out):
        pos = jnp.arange(n_out, dtype=jnp.float32) * ((n_in - 1) / max(n_out - 1, 1))
        lo = jnp.clip(jnp.floor(pos).astype(jnp.int32), 0, max(n_in - 2, 0))
        frac = pos - lo.astype(jnp.float32)
        a = jnp.take(arr, lo, axis=axis)
        c = jnp.take(arr, jnp.minimum(lo + 1, n_in - 1), axis=axis)
        shape = [1] * arr.ndim
        shape[axis] = n_out
        f = frac.reshape(shape)
        return a * (1.0 - f) + c * f

    N, H, W, C = x_nhwc.shape
    y = axis_interp(x_nhwc.astype(jnp.float32), 1, H, 2 * H)
    y = axis_interp(y, 2, W, 2 * W)
    return y


def _pad_or_crop_hw(x_nhwc, p):
    """F.pad(x, [p, p, p, p]) on an NCHW tensor == pad/crop H and W by p each side."""
    if p == 0:
        return x_nhwc
    if p > 0:
        return jnp.pad(x_nhwc, ((0, 0), (p, p), (p, p), (0, 0)))
    c = -p
    return x_nhwc[:, c:x_nhwc.shape[1] - c, c:x_nhwc.shape[2] - c, :]


# ----------------------------------------------------------------------------
# Parameters (deterministic, synthetic) & forward pass
# ----------------------------------------------------------------------------
def init_unet_up(key, in_size, out_size):
    k1, k2, k3, k4, k5, k6 = jax.random.split(key, 6)
    return {
        # ConvTranspose2d(in_size, out_size, 2, 2): weight (Cin, Cout, 2, 2)
        "up_w": 0.1 * jax.random.normal(k1, (in_size, out_size, 2, 2), jnp.float32),
        "up_b": 0.1 * jax.random.normal(k2, (out_size,), jnp.float32),
        # unetConv2(in_size, out_size, is_batchnorm=False)
        "conv1_w": 0.1 * jax.random.normal(k3, (out_size, in_size, 3, 3), jnp.float32),
        "conv1_b": 0.1 * jax.random.normal(k4, (out_size,), jnp.float32),
        "conv2_w": 0.1 * jax.random.normal(k5, (out_size, out_size, 3, 3), jnp.float32),
        "conv2_b": 0.1 * jax.random.normal(k6, (out_size,), jnp.float32),
    }


def unet_up_fwd(params, inputs1_nchw, inputs2_nchw, is_deconv=True):
    x1 = jnp.transpose(inputs1_nchw, (0, 2, 3, 1))   # NCHW -> NHWC
    x2 = jnp.transpose(inputs2_nchw, (0, 2, 3, 1))

    if is_deconv:
        up2 = deconv2x2_s2(x2, params["up_w"], params["up_b"])          # bf16
    else:
        up2 = upsample_bilinear_2x(x2)

    # offset = outputs2.H - inputs1.H ; F.pad(inputs1, [o//2]*4)
    offset = up2.shape[1] - x1.shape[1]
    assert offset % 2 == 0, "odd pad offset would not match the PyTorch reference"
    x1p = _pad_or_crop_hw(x1, offset // 2)

    assert x1p.shape[1:3] == up2.shape[1:3], (x1p.shape, up2.shape)
    # Concat in bf16 so all inter-stage HBM traffic stays at half width.
    x = jnp.concatenate([x1p.astype(jnp.bfloat16), up2.astype(jnp.bfloat16)], axis=-1)

    h = conv3x3_bias_relu(x, params["conv1_w"], params["conv1_b"])
    h = conv3x3_bias_relu(h, params["conv2_w"], params["conv2_b"])
    return jnp.transpose(h, (0, 3, 1, 2)).astype(jnp.float32)   # NHWC -> NCHW, f32 out


# ----------------------------------------------------------------------------
if __name__ == "__main__":
    # unetUp(in_size=8, out_size=4, is_deconv=True)
    #   inputs1: skip feature,  (in_size - out_size) = 4 channels @ 16x16
    #   inputs2: coarse feature, in_size = 8 channels @ 8x8  -> up -> 4 @ 16x16
    in_size, out_size = 8, 4

    root = jax.random.PRNGKey(0)
    k1, k2, kp = jax.random.split(root, 3)
    inputs1 = jax.random.normal(k1, (2, 4, 16, 16), jnp.float32)  # NCHW
    inputs2 = jax.random.normal(k2, (2, 8, 8, 8), jnp.float32)    # NCHW
    params = init_unet_up(kp, in_size, out_size)

    fwd = jax.jit(functools.partial(unet_up_fwd, is_deconv=True))
    out = fwd(params, inputs1, inputs2)
    jax.block_until_ready(out)

    # cat -> (2, 8, 16, 16); conv1 (3x3, pad 0) -> 14x14; conv2 -> 12x12
    assert out.shape == (2, out_size, 12, 12), out.shape
    assert bool(jnp.all(jnp.isfinite(out)))
    print("KERNEL_OK")
</pallas_src>

<mosaic_0001>
module attributes {stable_mosaic.version = 11 : i64} {
  func.func @_gemm_bias_act_kernel(%arg0: i32, %arg1: i32, %arg2: i32, %arg3: memref<128x128xbf16, #tpu.memory_space<vmem>>, %arg4: memref<128x128xbf16, #tpu.memory_space<vmem>>, %arg5: memref<1x128xf32, #tpu.memory_space<vmem>>, %arg6: memref<128x128xbf16, #tpu.memory_space<vmem>>, %arg7: memref<128x128xf32, #tpu.memory_space<vmem>>) attributes {dimension_semantics = [#tpu.dimension_semantics<parallel>, #tpu.dimension_semantics<parallel>, #tpu.dimension_semantics<arbitrary>], iteration_bounds = array<i64: 1, 1, 1>, scalar_prefetch = 0 : i64, scratch_operands = 1 : i64, tpu.core_type = #tpu.core_type<tc>, window_params = [{transform_indices = @transform_0, window_bounds = array<i64: 128, 128>}, {transform_indices = @transform_1, window_bounds = array<i64: 128, 128>}, {transform_indices = @transform_2, window_bounds = array<i64: 1, 128>}, {transform_indices = @transform_3, window_bounds = array<i64: 128, 128>}]} {
    %c0_i32 = arith.constant 0 : i32
    %0 = arith.cmpi eq, %arg2, %c0_i32 : i32
    %1 = arith.extui %0 : i1 to i32
    %c0_i32_0 = arith.constant 0 : i32
    %2 = arith.cmpi ne, %1, %c0_i32_0 : i32
    scf.if %2 {
      %cst_10 = arith.constant 0.000000e+00 : f32
      %12 = vector.broadcast %cst_10 : f32 to vector<128x128xf32>
      %c0_11 = arith.constant 0 : index
      %c0_12 = arith.constant 0 : index
      %13 = vector.load %arg7[%c0_11, %c0_12] : memref<128x128xf32, #tpu.memory_space<vmem>>, vector<128x128xf32>
      tpu.vector_store %arg7[%c0_11, %c0_12], %12 {strides = array<i32>} : memref<128x128xf32, #tpu.memory_space<vmem>>, vector<128x128xf32>,
    } else {
    }
    %c0 = arith.constant 0 : index
    %c0_1 = arith.constant 0 : index
    %3 = vector.load %arg7[%c0, %c0_1] : memref<128x128xf32, #tpu.memory_space<vmem>>, vector<128x128xf32>
    %c0_2 = arith.constant 0 : index
    %c0_3 = arith.constant 0 : index
    %4 = vector.load %arg3[%c0_2, %c0_3] : memref<128x128xbf16, #tpu.memory_space<vmem>>, vector<128x128xbf16>
    %c0_4 = arith.constant 0 : index
    %c0_5 = arith.constant 0 : index
    %5 = vector.load %arg4[%c0_4, %c0_5] : memref<128x128xbf16, #tpu.memory_space<vmem>>, vector<128x128xbf16>
    %cst = arith.constant dense<0.000000e+00> : vector<128x128xf32>
    %6 = tpu.matmul %4, %5, %cst {dimension_numbers = #tpu.dot_dimension_numbers<[1], [0], [0], [1], [0, 0, 1, 1], [], []>} : vector<128x128xbf16>, vector<128x128xbf16>, vector<128x128xf32> -> vector<128x128xf32>
    %7 = arith.addf %3, %6 : vector<128x128xf32>
    %c0_6 = arith.constant 0 : index
    %c0_7 = arith.constant 0 : index
    %8 = vector.load %arg7[%c0_6, %c0_7] : memref<128x128xf32, #tpu.memory_space<vmem>>, vector<128x128xf32>
    tpu.vector_store %arg7[%c0_6, %c0_7], %7 {strides = array<i32>} : memref<128x128xf32, #tpu.memory_space<vmem>>, vector<128x128xf32>,
    %c0_i32_8 = arith.constant 0 : i32
    %9 = arith.cmpi eq, %arg2, %c0_i32_8 : i32
    %10 = arith.extui %9 : i1 to i32
    %c0_i32_9 = arith.constant 0 : i32
    %11 = arith.cmpi ne, %10, %c0_i32_9 : i32
    scf.if %11 {
      %c0_10 = arith.constant 0 : index
      %c0_11 = arith.constant 0 : index
      %12 = vector.load %arg7[%c0_10, %c0_11] : memref<128x128xf32, #tpu.memory_space<vmem>>, vector<128x128xf32>
      %c0_12 = arith.constant 0 : index
      %c0_13 = arith.constant 0 : index
      %13 = vector.load %arg5[%c0_12, %c0_13] : memref<1x128xf32, #tpu.memory_space<vmem>>, vector<1x128xf32>
      %14 = vector.broadcast %13 : vector<1x128xf32> to vector<128x128xf32>
      %15 = arith.addf %12, %14 : vector<128x128xf32>
      %16 = arith.truncf %15 : vector<128x128xf32> to vector<128x128xbf16>
      %c0_14 = arith.constant 0 : index
      %c0_15 = arith.constant 0 : index
      %17 = vector.load %arg6[%c0_14, %c0_15] : memref<128x128xbf16, #tpu.memory_space<vmem>>, vector<128x128xbf16>
      tpu.vector_store %arg6[%c0_14, %c0_15], %16 {strides = array<i32>} : memref<128x128xbf16, #tpu.memory_space<vmem>>, vector<128x128xbf16>,
    } else {
    }
    return
  }
  func.func @transform_0(%arg0: i32, %arg1: i32, %arg2: i32) -> (i32, i32) {
    %c0_i32 = arith.constant 0 : i32
    return %arg0, %arg2 : i32, i32
  }
  func.func @transform_1(%arg0: i32, %arg1: i32, %arg2: i32) -> (i32, i32) {
    %c0_i32 = arith.constant 0 : i32
    return %arg2, %arg1 : i32, i32
  }
  func.func @transform_2(%arg0: i32, %arg1: i32, %arg2: i32) -> (i32, i32) {
    %c0_i32 = arith.constant 0 : i32
    %c0_i32_0 = arith.constant 0 : i32
    return %c0_i32, %arg1 : i32, i32
  }
  func.func @transform_3(%arg0: i32, %arg1: i32, %arg2: i32) -> (i32, i32) {
    %c0_i32 = arith.constant 0 : i32
    return %arg0, %arg1 : i32, i32
  }
}

module attributes {stable_mosaic.version = 11 : i64} {
  func.func @_conv3x3_kernel(%arg0: i32, %arg1: i32, %arg2: i32, %arg3: i32, %arg4: memref<1x1x16x8xbf16, #tpu.memory_space<vmem>>, %arg5: memref<1x3x8x128xbf16, #tpu.memory_space<vmem>>, %arg6: memref<1x128xf32, #tpu.memory_space<vmem>>, %arg7: memref<1x1x14x128xbf16, #tpu.memory_space<vmem>>, %arg8: memref<14x128xf32, #tpu.memory_space<vmem>>) attributes {dimension_semantics = [#tpu.dimension_semantics<parallel>, #tpu.dimension_semantics<parallel>, #tpu.dimension_semantics<parallel>, #tpu.dimension_semantics<arbitrary>], iteration_bounds = array<i64: 2, 14, 1, 3>, scalar_prefetch = 0 : i64, scratch_operands = 1 : i64, tpu.core_type = #tpu.core_type<tc>, window_params = [{transform_indices = @transform_0, window_bounds = array<i64: 1, 1, 16, 8>}, {transform_indices = @transform_1, window_bounds = array<i64: 1, 3, 8, 128>}, {transform_indices = @transform_2, window_bounds = array<i64: 1, 128>}, {transform_indices = @transform_3, window_bounds = array<i64: 1, 1, 14, 128>}]} {
    %c0_i32 = arith.constant 0 : i32
    %0 = arith.cmpi eq, %arg3, %c0_i32 : i32
    %1 = arith.extui %0 : i1 to i32
    %c0_i32_0 = arith.constant 0 : i32
    %2 = arith.cmpi ne, %1, %c0_i32_0 : i32
    scf.if %2 {
      %cst_29 = arith.constant 0.000000e+00 : f32
      %26 = vector.broadcast %cst_29 : f32 to vector<14x128xf32>
      %c0_30 = arith.constant 0 : index
      %c0_31 = arith.constant 0 : index
      %27 = vector.load %arg8[%c0_30, %c0_31] : memref<14x128xf32, #tpu.memory_space<vmem>>, vector<14x128xf32>
      tpu.vector_store %arg8[%c0_30, %c0_31], %26 {strides = array<i32>} : memref<14x128xf32, #tpu.memory_space<vmem>>, vector<14x128xf32>,
    } else {
    }
    %c0 = arith.constant 0 : index
    %c0_1 = arith.constant 0 : index
    %c0_2 = arith.constant 0 : index
    %c0_3 = arith.constant 0 : index
    %3 = vector.load %arg4[%c0, %c0_1, %c0_2, %c0_3] : memref<1x1x16x8xbf16, #tpu.memory_space<vmem>>, vector<1x1x14x8xbf16>
    %4 = vector.shape_cast %3 : vector<1x1x14x8xbf16> to vector<14x8xbf16>
    %c0_4 = arith.constant 0 : index
    %c0_5 = arith.constant 0 : index
    %c0_6 = arith.constant 0 : index
    %c0_7 = arith.constant 0 : index
    %5 = vector.load %arg5[%c0_4, %c0_5, %c0_6, %c0_7] : memref<1x3x8x128xbf16, #tpu.memory_space<vmem>>, vector<1x1x8x128xbf16>
    %6 = vector.shape_cast %5 : vector<1x1x8x128xbf16> to vector<8x128xbf16>
    %cst = arith.constant dense<0.000000e+00> : vector<14x128xf32>
    %7 = tpu.matmul %4, %6, %cst {dimension_numbers = #tpu.dot_dimension_numbers<[1], [0], [0], [1], [0, 0, 1, 1], [], []>} : vector<14x8xbf16>, vector<8x128xbf16>, vector<14x128xf32> -> vector<14x128xf32>
    %c0_8 = arith.constant 0 : index
    %c0_9 = arith.constant 0 : index
    %c1 = arith.constant 1 : index
    %c0_10 = arith.constant 0 : index
    %8 = vector.load %arg4[%c0_8, %c0_9, %c1, %c0_10] : memref<1x1x16x8xbf16, #tpu.memory_space<vmem>>, vector<1x1x14x8xbf16>
    %9 = vector.shape_cast %8 : vector<1x1x14x8xbf16> to vector<14x8xbf16>
    %c0_11 = arith.constant 0 : index
    %c1_12 = arith.constant 1 : index
    %c0_13 = arith.constant 0 : index
    %c0_14 = arith.constant 0 : index
    %10 = vector.load %arg5[%c0_11, %c1_12, %c0_13, %c0_14] : memref<1x3x8x128xbf16, #tpu.memory_space<vmem>>, vector<1x1x8x128xbf16>
    %11 = vector.shape_cast %10 : vector<1x1x8x128xbf16> to vector<8x128xbf16>
    %cst_15 = arith.constant dense<0.000000e+00> : vector<14x128xf32>
    %12 = tpu.matmul %9, %11, %cst_15 {dimension_numbers = #tpu.dot_dimension_numbers<[1], [0], [0], [1], [0, 0, 1, 1], [], []>} : vector<14x8xbf16>, vector<8x128xbf16>, vector<14x128xf32> -> vector<14x128xf32>
    %13 = arith.addf %7, %12 : vector<14x128xf32>
    %c0_16 = arith.constant 0 : index
    %c0_17 = arith.constant 0 : index
    %c2 = arith.constant 2 : index
    %c0_18 = arith.constant 0 : index
    %14 = vector.load %arg4[%c0_16, %c0_17, %c2, %c0_18] : memref<1x1x16x8xbf16, #tpu.memory_space<vmem>>, vector<1x1x14x8xbf16>
    %15 = vector.shape_cast %14 : vector<1x1x14x8xbf16> to vector<14x8xbf16>
    %c0_19 = arith.constant 0 : index
    %c2_20 = arith.constant 2 : index
    %c0_21 = arith.constant 0 : index
    %c0_22 = arith.constant 0 : index
    %16 = vector.load %arg5[%c0_19, %c2_20, %c0_21, %c0_22] : memref<1x3x8x128xbf16, #tpu.memory_space<vmem>>, vector<1x1x8x128xbf16>
    %17 = vector.shape_cast %16 : vector<1x1x8x128xbf16> to vector<8x128xbf16>
    %cst_23 = arith.constant dense<0.000000e+00> : vector<14x128xf32>
    %18 = tpu.matmul %15, %17, %cst_23 {dimension_numbers = #tpu.dot_dimension_numbers<[1], [0], [0], [1], [0, 0, 1, 1], [], []>} : vector<14x8xbf16>, vector<8x128xbf16>, vector<14x128xf32> -> vector<14x128xf32>
    %19 = arith.addf %13, %18 : vector<14x128xf32>
    %c0_24 = arith.constant 0 : index
    %c0_25 = arith.constant 0 : index
    %20 = vector.load %arg8[%c0_24, %c0_25] : memref<14x128xf32, #tpu.memory_space<vmem>>, vector<14x128xf32>
    %21 = arith.addf %20, %19 : vector<14x128xf32>
    %c0_26 = arith.constant 0 : index
    %c0_27 = arith.constant 0 : index
    %22 = vector.load %arg8[%c0_26, %c0_27] : memref<14x128xf32, #tpu.memory_space<vmem>>, vector<14x128xf32>
    tpu.vector_store %arg8[%c0_26, %c0_27], %21 {strides = array<i32>} : memref<14x128xf32, #tpu.memory_space<vmem>>, vector<14x128xf32>,
    %c2_i32 = arith.constant 2 : i32
    %23 = arith.cmpi eq, %arg3, %c2_i32 : i32
    %24 = arith.extui %23 : i1 to i32
    %c0_i32_28 = arith.constant 0 : i32
    %25 = arith.cmpi ne, %24, %c0_i32_28 : i32
    scf.if %25 {
      %c0_29 = arith.constant 0 : index
      %c0_30 = arith.constant 0 : index
      %26 = vector.load %arg8[%c0_29, %c0_30] : memref<14x128xf32, #tpu.memory_space<vmem>>, vector<14x128xf32>
      %c0_31 = arith.constant 0 : index
      %c0_32 = arith.constant 0 : index
      %27 = vector.load %arg6[%c0_31, %c0_32] : memref<1x128xf32, #tpu.memory_space<vmem>>, vector<1x128xf32>
      %28 = vector.broadcast %27 : vector<1x128xf32> to vector<14x128xf32>
      %29 = arith.addf %26, %28 : vector<14x128xf32>
      %cst_33 = arith.constant 0.000000e+00 : f32
      %30 = vector.broadcast %cst_33 : f32 to vector<14x128xf32>
      %31 = arith.maximumf %29, %30 : vector<14x128xf32>
      %32 = arith.truncf %31 : vector<14x128xf32> to vector<14x128xbf16>
      %c0_34 = arith.constant 0 : index
      %c0_35 = arith.constant 0 : index
      %c0_36 = arith.constant 0 : index
      %c0_37 = arith.constant 0 : index
      %33 = vector.load %arg7[%c0_34, %c0_35, %c0_36, %c0_37] : memref<1x1x14x128xbf16, #tpu.memory_space<vmem>>, vector<1x1x14x128xbf16>
      %34 = vector.shape_cast %33 : vector<1x1x14x128xbf16> to vector<14x128xbf16>
      %35 = vector.shape_cast %32 : vector<14x128xbf16> to vector<1x1x14x128xbf16>
      tpu.vector_store %arg7[%c0_34, %c0_35, %c0_36, %c0_37], %35 {strides = array<i32>} : memref<1x1x14x128xbf16, #tpu.memory_space<vmem>>, vector<1x1x14x128xbf16>,
    } else {
    }
    return
  }
  func.func @transform_0(%arg0: i32, %arg1: i32, %arg2: i32, %arg3: i32) -> (i32, i32, i32, i32) {
    %0 = arith.addi %arg1, %arg3 : i32
    %c0_i32 = arith.constant 0 : i32
    %c0_i32_0 = arith.constant 0 : i32
    %c0_i32_1 = arith.constant 0 : i32
    return %arg0, %0, %c0_i32, %c0_i32_0 : i32, i32, i32, i32
  }
  func.func @transform_1(%arg0: i32, %arg1: i32, %arg2: i32, %arg3: i32) -> (i32, i32, i32, i32) {
    %c0_i32 = arith.constant 0 : i32
    %c0_i32_0 = arith.constant 0 : i32
    %c0_i32_1 = arith.constant 0 : i32
    return %arg3, %c0_i32, %c0_i32_0, %arg2 : i32, i32, i32, i32
  }
  func.func @transform_2(%arg0: i32, %arg1: i32, %arg2: i32, %arg3: i32) -> (i32, i32) {
    %c0_i32 = arith.constant 0 : i32
    %c0_i32_0 = arith.constant 0 : i32
    return %c0_i32, %arg2 : i32, i32
  }
  func.func @transform_3(%arg0: i32, %arg1: i32, %arg2: i32, %arg3: i32) -> (i32, i32, i32, i32) {
    %c0_i32 = arith.constant 0 : i32
    %c0_i32_0 = arith.constant 0 : i32
    return %arg0, %arg1, %c0_i32, %arg2 : i32, i32, i32, i32
  }
}

module attributes {stable_mosaic.version = 11 : i64} {
  func.func @_conv3x3_kernel(%arg0: i32, %arg1: i32, %arg2: i32, %arg3: i32, %arg4: memref<1x1x14x4xbf16, #tpu.memory_space<vmem>>, %arg5: memref<1x3x4x128xbf16, #tpu.memory_space<vmem>>, %arg6: memref<1x128xf32, #tpu.memory_space<vmem>>, %arg7: memref<1x1x12x128xbf16, #tpu.memory_space<vmem>>, %arg8: memref<12x128xf32, #tpu.memory_space<vmem>>) attributes {dimension_semantics = [#tpu.dimension_semantics<parallel>, #tpu.dimension_semantics<parallel>, #tpu.dimension_semantics<parallel>, #tpu.dimension_semantics<arbitrary>], iteration_bounds = array<i64: 2, 12, 1, 3>, scalar_prefetch = 0 : i64, scratch_operands = 1 : i64, tpu.core_type = #tpu.core_type<tc>, window_params = [{transform_indices = @transform_0, window_bounds = array<i64: 1, 1, 14, 4>}, {transform_indices = @transform_1, window_bounds = array<i64: 1, 3, 4, 128>}, {transform_indices = @transform_2, window_bounds = array<i64: 1, 128>}, {transform_indices = @transform_3, window_bounds = array<i64: 1, 1, 12, 128>}]} {
    %c0_i32 = arith.constant 0 : i32
    %0 = arith.cmpi eq, %arg3, %c0_i32 : i32
    %1 = arith.extui %0 : i1 to i32
    %c0_i32_0 = arith.constant 0 : i32
    %2 = arith.cmpi ne, %1, %c0_i32_0 : i32
    scf.if %2 {
      %cst_29 = arith.constant 0.000000e+00 : f32
      %26 = vector.broadcast %cst_29 : f32 to vector<12x128xf32>
      %c0_30 = arith.constant 0 : index
      %c0_31 = arith.constant 0 : index
      %27 = vector.load %arg8[%c0_30, %c0_31] : memref<12x128xf32, #tpu.memory_space<vmem>>, vector<12x128xf32>
      tpu.vector_store %arg8[%c0_30, %c0_31], %26 {strides = array<i32>} : memref<12x128xf32, #tpu.memory_space<vmem>>, vector<12x128xf32>,
    } else {
    }
    %c0 = arith.constant 0 : index
    %c0_1 = arith.constant 0 : index
    %c0_2 = arith.constant 0 : index
    %c0_3 = arith.constant 0 : index
    %3 = vector.load %arg4[%c0, %c0_1, %c0_2, %c0_3] : memref<1x1x14x4xbf16, #tpu.memory_space<vmem>>, vector<1x1x12x4xbf16>
    %4 = vector.shape_cast %3 : vector<1x1x12x4xbf16> to vector<12x4xbf16>
    %c0_4 = arith.constant 0 : index
    %c0_5 = arith.constant 0 : index
    %c0_6 = arith.constant 0 : index
    %c0_7 = arith.constant 0 : index
    %5 = vector.load %arg5[%c0_4, %c0_5, %c0_6, %c0_7] : memref<1x3x4x128xbf16, #tpu.memory_space<vmem>>, vector<1x1x4x128xbf16>
    %6 = vector.shape_cast %5 : vector<1x1x4x128xbf16> to vector<4x128xbf16>
    %cst = arith.constant dense<0.000000e+00> : vector<12x128xf32>
    %7 = tpu.matmul %4, %6, %cst {dimension_numbers = #tpu.dot_dimension_numbers<[1], [0], [0], [1], [0, 0, 1, 1], [], []>} : vector<12x4xbf16>, vector<4x128xbf16>, vector<12x128xf32> -> vector<12x128xf32>
    %c0_8 = arith.constant 0 : index
    %c0_9 = arith.constant 0 : index
    %c1 = arith.constant 1 : index
    %c0_10 = arith.constant 0 : index
    %8 = vector.load %arg4[%c0_8, %c0_9, %c1, %c0_10] : memref<1x1x14x4xbf16, #tpu.memory_space<vmem>>, vector<1x1x12x4xbf16>
    %9 = vector.shape_cast %8 : vector<1x1x12x4xbf16> to vector<12x4xbf16>
    %c0_11 = arith.constant 0 : index
    %c1_12 = arith.constant 1 : index
    %c0_13 = arith.constant 0 : index
    %c0_14 = arith.constant 0 : index
    %10 = vector.load %arg5[%c0_11, %c1_12, %c0_13, %c0_14] : memref<1x3x4x128xbf16, #tpu.memory_space<vmem>>, vector<1x1x4x128xbf16>
    %11 = vector.shape_cast %10 : vector<1x1x4x128xbf16> to vector<4x128xbf16>
    %cst_15 = arith.constant dense<0.000000e+00> : vector<12x128xf32>
    %12 = tpu.matmul %9, %11, %cst_15 {dimension_numbers = #tpu.dot_dimension_numbers<[1], [0], [0], [1], [0, 0, 1, 1], [], []>} : vector<12x4xbf16>, vector<4x128xbf16>, vector<12x128xf32> -> vector<12x128xf32>
    %13 = arith.addf %7, %12 : vector<12x128xf32>
    %c0_16 = arith.constant 0 : index
    %c0_17 = arith.constant 0 : index
    %c2 = arith.constant 2 : index
    %c0_18 = arith.constant 0 : index
    %14 = vector.load %arg4[%c0_16, %c0_17, %c2, %c0_18] : memref<1x1x14x4xbf16, #tpu.memory_space<vmem>>, vector<1x1x12x4xbf16>
    %15 = vector.shape_cast %14 : vector<1x1x12x4xbf16> to vector<12x4xbf16>
    %c0_19 = arith.constant 0 : index
    %c2_20 = arith.constant 2 : index
    %c0_21 = arith.constant 0 : index
    %c0_22 = arith.constant 0 : index
    %16 = vector.load %arg5[%c0_19, %c2_20, %c0_21, %c0_22] : memref<1x3x4x128xbf16, #tpu.memory_space<vmem>>, vector<1x1x4x128xbf16>
    %17 = vector.shape_cast %16 : vector<1x1x4x128xbf16> to vector<4x128xbf16>
    %cst_23 = arith.constant dense<0.000000e+00> : vector<12x128xf32>
    %18 = tpu.matmul %15, %17, %cst_23 {dimension_numbers = #tpu.dot_dimension_numbers<[1], [0], [0], [1], [0, 0, 1, 1], [], []>} : vector<12x4xbf16>, vector<4x128xbf16>, vector<12x128xf32> -> vector<12x128xf32>
    %19 = arith.addf %13, %18 : vector<12x128xf32>
    %c0_24 = arith.constant 0 : index
    %c0_25 = arith.constant 0 : index
    %20 = vector.load %arg8[%c0_24, %c0_25] : memref<12x128xf32, #tpu.memory_space<vmem>>, vector<12x128xf32>
    %21 = arith.addf %20, %19 : vector<12x128xf32>
    %c0_26 = arith.constant 0 : index
    %c0_27 = arith.constant 0 : index
    %22 = vector.load %arg8[%c0_26, %c0_27] : memref<12x128xf32, #tpu.memory_space<vmem>>, vector<12x128xf32>
    tpu.vector_store %arg8[%c0_26, %c0_27], %21 {strides = array<i32>} : memref<12x128xf32, #tpu.memory_space<vmem>>, vector<12x128xf32>,
    %c2_i32 = arith.constant 2 : i32
    %23 = arith.cmpi eq, %arg3, %c2_i32 : i32
    %24 = arith.extui %23 : i1 to i32
    %c0_i32_28 = arith.constant 0 : i32
    %25 = arith.cmpi ne, %24, %c0_i32_28 : i32
    scf.if %25 {
      %c0_29 = arith.constant 0 : index
      %c0_30 = arith.constant 0 : index
      %26 = vector.load %arg8[%c0_29, %c0_30] : memref<12x128xf32, #tpu.memory_space<vmem>>, vector<12x128xf32>
      %c0_31 = arith.constant 0 : index
      %c0_32 = arith.constant 0 : index
      %27 = vector.load %arg6[%c0_31, %c0_32] : memref<1x128xf32, #tpu.memory_space<vmem>>, vector<1x128xf32>
      %28 = vector.broadcast %27 : vector<1x128xf32> to vector<12x128xf32>
      %29 = arith.addf %26, %28 : vector<12x128xf32>
      %cst_33 = arith.constant 0.000000e+00 : f32
      %30 = vector.broadcast %cst_33 : f32 to vector<12x128xf32>
      %31 = arith.maximumf %29, %30 : vector<12x128xf32>
      %32 = arith.truncf %31 : vector<12x128xf32> to vector<12x128xbf16>
      %c0_34 = arith.constant 0 : index
      %c0_35 = arith.constant 0 : index
      %c0_36 = arith.constant 0 : index
      %c0_37 = arith.constant 0 : index
      %33 = vector.load %arg7[%c0_34, %c0_35, %c0_36, %c0_37] : memref<1x1x12x128xbf16, #tpu.memory_space<vmem>>, vector<1x1x12x128xbf16>
      %34 = vector.shape_cast %33 : vector<1x1x12x128xbf16> to vector<12x128xbf16>
      %35 = vector.shape_cast %32 : vector<12x128xbf16> to vector<1x1x12x128xbf16>
      tpu.vector_store %arg7[%c0_34, %c0_35, %c0_36, %c0_37], %35 {strides = array<i32>} : memref<1x1x12x128xbf16, #tpu.memory_space<vmem>>, vector<1x1x12x128xbf16>,
    } else {
    }
    return
  }
  func.func @transform_0(%arg0: i32, %arg1: i32, %arg2: i32, %arg3: i32) -> (i32, i32, i32, i32) {
    %0 = arith.addi %arg1, %arg3 : i32
    %c0_i32 = arith.constant 0 : i32
    %c0_i32_0 = arith.constant 0 : i32
    %c0_i32_1 = arith.constant 0 : i32
    return %arg0, %0, %c0_i32, %c0_i32_0 : i32, i32, i32, i32
  }
  func.func @transform_1(%arg0: i32, %arg1: i32, %arg2: i32, %arg3: i32) -> (i32, i32, i32, i32) {
    %c0_i32 = arith.constant 0 : i32
    %c0_i32_0 = arith.constant 0 : i32
    %c0_i32_1 = arith.constant 0 : i32
    return %arg3, %c0_i32, %c0_i32_0, %arg2 : i32, i32, i32, i32
  }
  func.func @transform_2(%arg0: i32, %arg1: i32, %arg2: i32, %arg3: i32) -> (i32, i32) {
    %c0_i32 = arith.constant 0 : i32
    %c0_i32_0 = arith.constant 0 : i32
    return %c0_i32, %arg2 : i32, i32
  }
  func.func @transform_3(%arg0: i32, %arg1: i32, %arg2: i32, %arg3: i32) -> (i32, i32, i32, i32) {
    %c0_i32 = arith.constant 0 : i32
    %c0_i32_0 = arith.constant 0 : i32
    return %arg0, %arg1, %c0_i32, %arg2 : i32, i32, i32, i32
  }
}

</mosaic_0001>

<bundles_post_ra>
// kernel: tile.8
= control target key start
LH: loop header
LB: loop body
LE: loop exit
PB: predicated region body
PF: predicated region fallthrough
CT: control target
= control target key end

     0   :  { %s22_s0 = inlined_call_operand.vmem [shape: f32[4], index: 0, kind: input, shape index: {}]   ;;  %s23_s1 = inlined_call_operand.vmem [shape: f32[4,4], index: 1, kind: output, shape index: {}]  }
   0x1   :  { %v4_v0 = vld [vmem:[%s22_s0] ss:$0 sm:$0xff] }
   0x2   :  { %5 = vst [vmem:[%s23_s1] sm:$0xf] %v4_v0 }

// kernel: tile.9
= control target key start
LH: loop header
LB: loop body
LE: loop exit
PB: predicated region body
PF: predicated region fallthrough
CT: control target
= control target key end

     0   :  { %vm7_vm0 = vcmask 31744   ;;  %s37_s8 = smov 4   ;;  %s38_s9 = smov 8   ;;  %vm13_vm1 = vcmask 130144   ;;  %vm19_vm2 = vcmask 97344   ;;  %vm25_vm3 = vcmask 64544   ;;  %s55_s0 = inlined_call_operand.vmem [shape: f32[4,4], index: 0, kind: input, shape index: {}]   ;;  %s56_s1 = inlined_call_operand.vmem [shape: f32[1,16], index: 1, kind: output, shape index: {}]  }
   0x1   :  { %v4_v0 = vld [vmem:[%s55_s0] sm:$0xf]  ;;  %s36_s0 = smov 12  }
   0x2   :  { %5 = vst [vmem:[#allocation1] sm:$0xf] %v4_v0 }
   0x9   :  { %v10_v1 = vld [vmem:[#allocation1 + $0x3] sm:$0x1]   ;;  %v22_v2 = vld [vmem:[#allocation1 + $0x1] sm:$0x1]   ;;  %v6_v3 = vld [vmem:[#allocation1] sm:$0x1]  }
   0xa   :  { %11 = vrot.lane.b32.xlu0 %v10_v1, %s36_s0  ;;  %23 = vrot.lane.b32.xlu1 %v22_v2, %s37_s8  ;;  %v16_v4 = vld [vmem:[#allocation1 + $0x2] sm:$0x1]   ;;  %8 = vst.msk [vmem:[#allocation0] sm:$0x1] %vm7_vm0, %v6_v3  }
   0xe   :  { %17 = vrot.lane.b32.xlu0 %v16_v4, %s38_s9 }
  0x7c   :  { %v12_v5 = vpop.permute.xlu0 %11   ;;  %v24_v6 = vpop.permute.xlu1 %23  }
  0x7d   :  { %14 = vst.msk [vmem:[#allocation0] sm:$0x1] %vm13_vm1, %v12_v5  }
  0x80   :  { %v18_v7 = vpop.permute.xlu0 %17  }
  0x81   :  { %20 = vst.msk [vmem:[#allocation0] sm:$0x1] %vm19_vm2, %v18_v7  }
  0x82   :  { %26 = vst.msk [vmem:[#allocation0] sm:$0x1] %vm25_vm3, %v24_v6  }
  0x89   :  { %v30_v8 = vld [vmem:[#allocation0] sm:$0x1] }
  0x8a   :  { %32 = vst [vmem:[%s56_s1] sm:$0x1] %v30_v8 }

// kernel: unet_up_fwd.3
= control target key start
LH: loop header
LB: loop body
LE: loop exit
PB: predicated region body
PF: predicated region fallthrough
CT: control target
= control target key end

     0   :  { %s705_s1 = inlined_call_operand.vmem [shape: bf16[128,128], index: 1, kind: input, shape index: {}]   ;;  %s706_s0 = inlined_call_operand.vmem [shape: bf16[128,128], index: 0, kind: input, shape index: {}]   ;;  %s707_s2 = inlined_call_operand.vmem [shape: f32[1,128], index: 2, kind: input, shape index: {}]   ;;  %s708_s3 = inlined_call_operand.vmem [shape: bf16[128,128], index: 3, kind: output, shape index: {}]  }
   0x1   :  { %v594_v0 = vld [vmem:[%s705_s1] sm:$0xff]   ;;  %v595_v1 = vld [vmem:[%s705_s1 + $0x8] sm:$0xff]   ;;  %v596_v2 = vld [vmem:[%s705_s1 + $0x10] sm:$0xff]  }
   0x2   :  { %546 = vmatprep.subr.bf16.mxu0 %v594_v0  ;;  %578 = vmatprep.subr.bf16.mxu1 %v594_v0  ;;  %v597_v3 = vld [vmem:[%s705_s1 + $0x18] sm:$0xff]   ;;  %v602_v4 = vld [vmem:[%s706_s0] sm:$0xff]   ;;  %v599_v7 = vld [vmem:[%s705_s1 + $0x28] sm:$0xff]  }
   0x3   :  { %547 = vmatpush3.bf16.msra.mxu0 %v594_v0  ;;  %586 = vmatpush3.bf16.msra.mxu1 %v594_v0  ;;  %v603_v5 = vld [vmem:[%s706_s0 + $0x20] sm:$0xff]   ;;  %v600_v8 = vld [vmem:[%s705_s1 + $0x30] sm:$0xff]   ;;  %v601_v9 = vld [vmem:[%s705_s1 + $0x38] sm:$0xff]  }
   0x4   :  { %548 = vmatprep.subr.bf16.mxu0 %v595_v1  ;;  %579 = vmatprep.subr.bf16.mxu1 %v595_v1  ;;  %v598_v6 = vld [vmem:[%s705_s1 + $0x20] sm:$0xff]   ;;  %v604_v10 = vld [vmem:[%s706_s0 + $0x8] sm:$0xff]   ;;  %v606_v12 = vld [vmem:[%s706_s0 + $0x10] sm:$0xff]  }
   0x5   :  { %562 = vmatprep.mubr.bf16.mxu0 %v602_v4  ;;  %570 = vmatprep.mubr.bf16.mxu1 %v603_v5  ;;  %v605_v11 = vld [vmem:[%s706_s0 + $0x28] sm:$0xff]   ;;  %v607_v13 = vld [vmem:[%s706_s0 + $0x30] sm:$0xff]   ;;  %v608_v14 = vld [vmem:[%s706_s0 + $0x18] sm:$0xff]  }
   0x6   :  { %v609_v15 = vld [vmem:[%s706_s0 + $0x38] sm:$0xff]   ;;  %v450_v17 = vld [vmem:[%s707_s2] ss:$0 sm:$0xff] }
   0x7   :  { %549 = vmatpush3.bf16.msra.mxu0 %v595_v1  ;;  %587 = vmatpush3.bf16.msra.mxu1 %v595_v1 }
   0x8   :  { %550 = vmatprep.subr.bf16.mxu0 %v596_v2  ;;  %580 = vmatprep.subr.bf16.mxu1 %v596_v2 }
   0xb   :  { %551 = vmatpush3.bf16.msra.mxu0 %v596_v2  ;;  %588 = vmatpush3.bf16.msra.mxu1 %v596_v2 }
   0xc   :  { %552 = vmatprep.subr.bf16.mxu0 %v597_v3  ;;  %581 = vmatprep.subr.bf16.mxu1 %v597_v3 }
   0xf   :  { %553 = vmatpush3.bf16.msra.mxu0 %v597_v3  ;;  %589 = vmatpush3.bf16.msra.mxu1 %v597_v3 }
  0x10   :  { %554 = vmatprep.subr.bf16.mxu0 %v598_v6  ;;  %582 = vmatprep.subr.bf16.mxu1 %v598_v6 }
  0x13   :  { %555 = vmatpush3.bf16.msra.mxu0 %v598_v6  ;;  %590 = vmatpush3.bf16.msra.mxu1 %v598_v6 }
  0x14   :  { %556 = vmatprep.subr.bf16.mxu0 %v599_v7  ;;  %583 = vmatprep.subr.bf16.mxu1 %v599_v7 }
  0x17   :  { %557 = vmatpush3.bf16.msra.mxu0 %v599_v7  ;;  %591 = vmatpush3.bf16.msra.mxu1 %v599_v7 }
  0x18   :  { %558 = vmatprep.subr.bf16.mxu0 %v600_v8  ;;  %584 = vmatprep.subr.bf16.mxu1 %v600_v8 }
  0x1b   :  { %559 = vmatpush3.bf16.msra.mxu0 %v600_v8  ;;  %592 = vmatpush3.bf16.msra.mxu1 %v600_v8 }
  0x1c   :  { %560 = vmatprep.subr.bf16.mxu0 %v601_v9  ;;  %585 = vmatprep.subr.bf16.mxu1 %v601_v9 }
  0x1f   :  { %561 = vmatpush3.bf16.msra.mxu0 %v601_v9  ;;  %593 = vmatpush3.bf16.msra.mxu1 %v601_v9 }
  0x22   :  { %563 = vmatmul.mubr.bf16.vlgmr.msra.gmra.mrb[0].mxu0 %v604_v10  ;;  %571 = vmatmul.mubr.bf16.vlgmr.msra.gmra.mrb[0].mxu1 %v605_v11 }
  0x23   :  { %566 = vmatprep.mubr.bf16.mxu0 %v606_v12  ;;  %574 = vmatprep.mubr.bf16.mxu1 %v607_v13 }
  0x2a   :  { %567 = vmatmul.mubr.bf16.gmra.mrb[4].mxu0 %v608_v14  ;;  %575 = vmatmul.mubr.bf16.gmra.mrb[4].mxu1 %v609_v15 }
  0xf5   :  { %v564_v16 = vpop.f32.mrb[0].mxu0  ;;  %v572_v18 = vpop.f32.mrb[0].mxu1 }
  0xf6   :  { %v213_v19 = vpop.f32.mrb[1].mxu0  ;;  %v245_v20 = vpop.f32.mrb[1].mxu1  ;;  %v336_v23 = vadd.f32 %v564_v16, %v450_v17  ;;  %v344_v24 = vadd.f32 %v572_v18, %v450_v17 }
  0xf7   :  { %v565_v21 = vpop.f32.mrb[2].mxu0  ;;  %v573_v22 = vpop.f32.mrb[2].mxu1  ;;  %v334_v29 = vadd.f32 %v450_v17, %v213_v19  ;;  %v342_v30 = vadd.f32 %v450_v17, %v245_v20 }
  0xf8   :  { %v337_v25 = vadd.f32 %v565_v21, %v450_v17  ;;  %v345_v26 = vadd.f32 %v573_v22, %v450_v17  ;;  %v216_v27 = vpop.f32.mrb[3].mxu0  ;;  %v248_v28 = vpop.f32.mrb[3].mxu1 }
  0xf9   :  { %v335_v31 = vadd.f32 %v450_v17, %v216_v27  ;;  %v343_v32 = vadd.f32 %v450_v17, %v248_v28 }
  0xfa   :  { %v491_v33 = vpack.c.bf16 %v337_v25, %v336_v23  ;;  %v511_v34 = vpack.c.bf16 %v345_v26, %v344_v24 }
  0xfb   :  { %v486_v35 = vpack.c.bf16 %v335_v31, %v334_v29  ;;  %v506_v36 = vpack.c.bf16 %v343_v32, %v342_v30 }
  0xfc   :  { %523 = vst [vmem:[%s708_s3 + $0x8] sm:$0xff] %v491_v33   ;;  %527 = vst [vmem:[%s708_s3 + $0x28] sm:$0xff] %v511_v34  }
  0xfd   :  { %487 = vst [vmem:[%s708_s3] sm:$0xff] %v486_v35   ;;  %526 = vst [vmem:[%s708_s3 + $0x20] sm:$0xff] %v506_v36   ;;  %v568_v37 = vpop.f32.mrb[4].mxu0  ;;  %v576_v38 = vpop.f32.mrb[4].mxu1 }
  0xfe   :  { %v229_v39 = vpop.f32.mrb[5].mxu0  ;;  %v261_v40 = vpop.f32.mrb[5].mxu1  ;;  %v340_v43 = vadd.f32 %v568_v37, %v450_v17  ;;  %v348_v44 = vadd.f32 %v576_v38, %v450_v17 }
  0xff   :  { %v569_v41 = vpop.f32.mrb[6].mxu0  ;;  %v577_v42 = vpop.f32.mrb[6].mxu1  ;;  %v338_v49 = vadd.f32 %v450_v17, %v229_v39  ;;  %v346_v50 = vadd.f32 %v450_v17, %v261_v40 }
 0x100   :  { %v341_v45 = vadd.f32 %v569_v41, %v450_v17  ;;  %v349_v46 = vadd.f32 %v577_v42, %v450_v17  ;;  %v232_v47 = vpop.f32.mrb[7].mxu0  ;;  %v264_v48 = vpop.f32.mrb[7].mxu1 }
 0x101   :  { %v339_v51 = vadd.f32 %v450_v17, %v232_v47  ;;  %v347_v52 = vadd.f32 %v450_v17, %v264_v48 }
 0x102   :  { %v501_v53 = vpack.c.bf16 %v341_v45, %v340_v43  ;;  %v521_v54 = vpack.c.bf16 %v349_v46, %v348_v44 }
 0x103   :  { %v496_v55 = vpack.c.bf16 %v339_v51, %v338_v49  ;;  %v516_v56 = vpack.c.bf16 %v347_v52, %v346_v50 }
 0x104   :  { %525 = vst [vmem:[%s708_s3 + $0x18] sm:$0xff] %v501_v53   ;;  %529 = vst [vmem:[%s708_s3 + $0x38] sm:$0xff] %v521_v54  }
 0x105   :  { %524 = vst [vmem:[%s708_s3 + $0x10] sm:$0xff] %v496_v55   ;;  %528 = vst [vmem:[%s708_s3 + $0x30] sm:$0xff] %v516_v56  }

// kernel: unet_up_fwd.4
= control target key start
LH: loop header
LB: loop body
LE: loop exit
PB: predicated region body
PF: predicated region fallthrough
CT: control target
= control target key end

     0   :  { %s835_s12 = smov 0   ;;  %s837_s13 = smov 0   ;;  %s946_s0 = inlined_call_operand.vmem [shape: bf16[2,16,16,8], index: 0, kind: input, shape index: {}]   ;;  %s947_s1 = inlined_call_operand.vmem [shape: bf16[3,3,8,128], index: 1, kind: input, shape index: {}]   ;;  %s948_s2 = inlined_call_operand.vmem [shape: f32[1,128], index: 2, kind: input, shape index: {}]   ;;  %s949_s3 = inlined_call_operand.vmem [shape: bf16[2,14,14,128], index: 3, kind: output, shape index: {}]  }
   0x1   :  { %s839_s14 = smov 0   ;;  %s841_s15 = smov 0  }
   0x2   :  { %s843_s16 = smov 0   ;;  %s845_s17 = smov 0  }
   0x3   :  { %s847_s18 = smov 0  }
   0x4 LB: > { %s28_s19 = sadd.s32 1, %s798_s15  ;;  %s35_s20 = sadd.s32 1, %s802_s16  ;;  %s810_s18 = sphi %s847_s18, %s13_s18   ;;  %s806_s17 = sphi %s845_s17, %s955_s17   ;;  %s802_s16 = sphi %s843_s16, %s954_s16   ;;  %s798_s15 = sphi %s841_s15, %s953_s15   ;;  %s794_s14 = sphi %s839_s14, %s952_s14   ;;  %s790_s13 = sphi %s837_s13, %s951_s13   ;;  %s786_s12 = sphi %s835_s12, %s950_s12  }
   0x5   : > { %p29_p0 = scmp.ge.s32.totalorder %s28_s19, 3  ;;  %p644_p1 = scmp.ge.s32.totalorder %s810_s18, 1 }
   0x6   : > { %p200_p2 = scmp.lt.s32.totalorder %s810_s18, 85  ;;  %s39_s21 = sadd.s32 1, %s806_s17 }
   0x7   : > { %s957_s19 = smov (%p29_p0, %s28_s19), 0  ;;  %s959_s20 = smov (!%p29_p0, %s35_s20), %s802_s16 }
   0x8   : > { %p201_p3 = pnand %p644_p1, %p200_p2  ;;  %p37_p4 = scmp.ge.s32.totalorder %s959_s20, 14 }
   0x9   : > { %s247_s22 = sadd.s32 (!%p201_p3), %s786_s12, %s790_s13  ;;  %p248_p6 = scmp.lt.s32.totalorder (!%p201_p3), %s794_s14, 1 }
   0xa   : > { %s961_s20 = smov (%p37_p4, %s959_s20), 0  ;;  %s963_s21 = smov (!%p37_p4, %s39_s21), %s806_s17 }
   0xb   : > { %p41_p5 = scmp.ge.s32.totalorder %s963_s21, 2  ;;  %204 = sbr.rel (%p201_p3) target bundleno = 282 (0x11a), region = 32 }
   0xc   : > { %p250_p7 = scmp.lt.s32.totalorder (!%p201_p3), %s247_s22, 15  ;;  %p258_p8 = scmp.lt.s32.totalorder (!%p201_p3), %s786_s12, 2 }
   0xd   : > { %s965_s21 = smov (%p41_p5, %s963_s21), 0  ;;  %p271_p9 = scmp.lt.s32.totalorder (!%p201_p3), %s790_s13, 13 }
   0xe   : > { %p651_p10 = scmp.ne.s32.totalorder (!%p201_p3), %s786_s12, 0 }
  0x12   : > { %s967_s14 = smov (!%p248_p6, %s794_s14), 1  ;;  %s969_s22 = smov (!%p250_p7, %s247_s22), 15 }
  0x13   : > { %s646_s23 = sshll.u32 %s967_s14, 5  ;;  %s645_s24 = sshll.u32 %s969_s22, 1  ;;  %v812_v0 = vmov (!%p651_p10), 0.0  }
  0x14   : > { %s254_s25 = sadd.s32 %s646_s23, %s645_s24  ;;  %s693_s30 = smul.u32 28, %s967_s14  ;;  %286 = vst [vmem:[#allocation2] sm:$0xff] (!%p651_p10), %v812_v0  ;;  %287 = vst [vmem:[#allocation2 + $0x8] sm:$0x3f] (!%p651_p10), %v812_v0 }
  0x15   : > { %s647_s26 = sshll.u32 %s254_s25, 2  ;;  %s971_s13 = smov (!%p271_p9, %s790_s13), 13 }
  0x16   : > { %s888_s29 = scalar_lea.vmem %s946_s0, %s647_s26  ;;  %s649_s6 = sshll.u32 %s971_s13, 1 }
  0x17   : > { %s259_s4 = scalar_select %p258_p8, %s786_s12, 2 }
  0x18   : > { %s278_s10 = sadd.s32 %s693_s30, %s649_s6  ;;  %285 = sbr.rel (%p651_p10) target bundleno = 31 (0x1f), region = 36 }
  0x19   : > { %s692_s5 = smul.u32 12, %s259_s4  ;;  %s650_s11 = sshll.u32 %s278_s10, 2 }
  0x1a   : > { %s900_s24 = scalar_lea.vmem %s949_s3, %s650_s11 }
  0x1b   : > { %s895_s9 = scalar_lea.vmem %s947_s1, %s692_s5 }
  0x1f PF: > { %v652_v1 = vld [vmem:[%s895_s9 + $0x4] sm:$0xf]  ;;  %vm310_vm0 = vcmask 1043456   ;;  %v290_v2 = vld [vmem:[%s895_s9] sm:$0xf]  ;;  %v813_v3 = vmov 0.0  }
  0x20   : > { %674 = vmatprep.subr.bf16.mxu0 %v813_v3  ;;  %v312_v4 = vsel %vm310_vm0, %v652_v1, 0  ;;  %680 = vmatprep.subr.bf16.mxu1 %v813_v3  ;;  %v362_v5 = vsel %vm310_vm0, %v290_v2, 0  ;;  %v288_v6 = vld [vmem:[%s888_s29] sm:$0xf]  ;;  %v291_v7 = vld [vmem:[%s888_s29 + $0x4] sm:$0xf] }
  0x21   : > { %675 = vmatpush3.bf16.msra.mxu0 %v312_v4  ;;  %681 = vmatpush3.bf16.msra.mxu1 %v362_v5  ;;  %vm306_vm1 = vcmask 64512   ;;  %v289_v8 = vld [vmem:[%s888_s29 + $0x4] sm:$0x7]  ;;  %vm814_vm2 = vmmov 0   ;;  %v653_v9 = vcombine.low %v288_v6, %v291_v7  ;;  %v657_v13 = vld [vmem:[%s895_s9 + $0x8] sm:$0xf] }
  0x22   : > { %676 = vmatprep.mubr.msk.bf16.mxu0 %vm814_vm2, %v813_v3  ;;  %682 = vmatprep.mubr.msk.bf16.mxu1 %vm814_vm2, %v813_v3  ;;  %v655_v10 = vcombine.low %v288_v6, %v289_v8  ;;  %v405_v15 = vld [vmem:[%s888_s29] sm:$0xe]  ;;  %v416_v17 = vsel %vm310_vm0, %v657_v13, 0  ;;  %v462_v35 = vld [vmem:[#allocation2 + $0x8] sm:$0x3f]  ;;  %p660_p11 = scmp.ne.s32.totalorder %s786_s12, 2 }
  0x23   : > { %686 = vmatprep.subr.bf16.mxu0 %v813_v3  ;;  %v300_v11 = vshrl.u32 %v653_v9, 16  ;;  %v302_v12 = vshll.u32 %v653_v9, 16  ;;  %v658_v18 = vcombine.low %v405_v15, %v291_v7  ;;  %v461_v31 = vld [vmem:[#allocation2] sm:$0xff] }
  0x24   : > { %683 = vmatmul.mubr.msk.bf16.vlgmr.msra.gmra.mrb[0].mxu1 %vm306_vm1, %v655_v10  ;;  %v661_v41 = vld [vmem:[%s948_s2] ss:$0 sm:$0xff] (!%p660_p11) }
  0x25   : > { %v304_v14 = vrot.slane %v302_v12, 1  ;;  %v411_v19 = vrot.slane %v658_v18, 1 }
  0x27   : > { %v305_v16 = vor.u32 %v304_v14, %v300_v11 }
  0x29   : > { %677 = vmatmul.mubr.msk.bf16.vlgmr.msra.gmra.mrb[0].mxu0 %vm306_vm1, %v305_v16 }
  0x2a   : > { %687 = vmatpush3.bf16.msra.mxu0 %v416_v17  ;;  %688 = vmatprep.mubr.msk.bf16.mxu0 %vm814_vm2, %v813_v3 }
  0x31   : > { %689 = vmatmul.mubr.msk.bf16.vlgmr.msra.gmra.mrb[4].mxu0 %vm306_vm1, %v411_v19 }
  0xf7   : > { %v398_v20 = vpop.f32.mrb[0].mxu1 }
  0xf8   : > { %v684_v21 = vpop.f32.mrb[1].mxu1 }
  0xf9   : > { %v401_v22 = vpop.f32.mrb[2].mxu1 }
  0xfa   : > { %v685_v23 = vpop.f32.mrb[3].mxu1 }
  0xfc   : > { %v348_v24 = vpop.f32.mrb[0].mxu0 }
  0xfd   : > { %v399_v25 = vadd.f32 %v398_v20, %v348_v24  ;;  %v678_v26 = vpop.f32.mrb[1].mxu0 }
  0xfe   : > { %v351_v27 = vpop.f32.mrb[2].mxu0 }
  0xff   : > { %v402_v28 = vadd.f32 %v401_v22, %v351_v27  ;;  %v679_v29 = vpop.f32.mrb[3].mxu0 }
 0x104   : > { %v452_v30 = vpop.f32.mrb[4].mxu0 }
 0x105   : > { %v459_v32 = vadd.f32 %v452_v30, %v399_v25  ;;  %v690_v33 = vpop.f32.mrb[5].mxu0  ;;  %470 = sbr.rel (%p660_p11) target bundleno = 282 (0x11a), region = 40 }
 0x106   : > { %v455_v34 = vpop.f32.mrb[6].mxu0 }
 0x107   : > { %v463_v36 = vadd.f32 %v461_v31, %v459_v32  ;;  %v460_v37 = vadd.f32 %v455_v34, %v402_v28  ;;  %v691_v38 = vpop.f32.mrb[7].mxu0 }
 0x109   : > { %465 = vst [vmem:[#allocation2] sm:$0xff] %v463_v36  ;;  %v464_v39 = vadd.f32 %v462_v35, %v460_v37 }
 0x10b   : > { %466 = vst [vmem:[#allocation2 + $0x8] sm:$0x3f] %v464_v39 }
 0x110   : > { %v471_v40 = vld [vmem:[#allocation2] sm:$0xff] }
 0x111   : > { %v480_v43 = vadd.f32 %v661_v41, %v471_v40 }
 0x112   : > { %v472_v42 = vld [vmem:[#allocation2 + $0x8] sm:$0x3f] }
 0x113   : > { %v481_v44 = vadd.f32 %v661_v41, %v472_v42  ;;  %v482_v45 = vmax.f32 %v480_v43, 0.0 }
 0x115   : > { %v483_v46 = vmax.f32 %v481_v44, 0.0  ;;  %v666_v47 = vpack.c.bf16 %v482_v45, %v482_v45 }
 0x117   : > { %v667_v48 = vpack.c.bf16 %v483_v46, %v483_v46  ;;  %492 = vst [vmem:[%s900_s24] sm:$0xf] %v666_v47 }
 0x119   : > { %493 = vst [vmem:[%s900_s24 + $0x4] sm:$0x7] %v667_v48 }
 0x11a PF: > { %s13_s18 = sadd.s32 1, %s810_s18   ;;  %s950_s12 = smov %s798_s15 }
 0x11b   : > { %p10_p12 = scmp.ge.s32.totalorder %s13_s18, 86   ;;  %s951_s13 = smov %s802_s16 }
 0x11c   : > { %s952_s14 = smov %s806_s17  ;;  %s953_s15 = smov %s957_s19 }
 0x11d   : > { %s954_s16 = smov %s961_s20  ;;  %s955_s17 = smov %s965_s21 }
 0x11e   :  { %12 = sbr.rel (!%p10_p12) target bundleno = 4 (0x4), region = 78 }

// kernel: unet_up_fwd.5
= control target key start
LH: loop header
LB: loop body
LE: loop exit
PB: predicated region body
PF: predicated region fallthrough
CT: control target
= control target key end

     0   :  { %s835_s12 = smov 0   ;;  %s837_s13 = smov 0   ;;  %s946_s0 = inlined_call_operand.vmem [shape: bf16[2,14,14,4], index: 0, kind: input, shape index: {}]   ;;  %s947_s1 = inlined_call_operand.vmem [shape: bf16[3,3,4,128], index: 1, kind: input, shape index: {}]   ;;  %s948_s2 = inlined_call_operand.vmem [shape: f32[1,128], index: 2, kind: input, shape index: {}]   ;;  %s949_s3 = inlined_call_operand.vmem [shape: bf16[2,12,12,128], index: 3, kind: output, shape index: {}]  }
   0x1   :  { %s839_s14 = smov 0   ;;  %s841_s15 = smov 0  }
   0x2   :  { %s843_s16 = smov 0   ;;  %s845_s17 = smov 0  }
   0x3   :  { %s847_s18 = smov 0  }
   0x4 LB: > { %s28_s19 = sadd.s32 1, %s798_s15  ;;  %s35_s20 = sadd.s32 1, %s802_s16  ;;  %s810_s18 = sphi %s847_s18, %s13_s18   ;;  %s806_s17 = sphi %s845_s17, %s955_s17   ;;  %s802_s16 = sphi %s843_s16, %s954_s16   ;;  %s798_s15 = sphi %s841_s15, %s953_s15   ;;  %s794_s14 = sphi %s839_s14, %s952_s14   ;;  %s790_s13 = sphi %s837_s13, %s951_s13   ;;  %s786_s12 = sphi %s835_s12, %s950_s12  }
   0x5   : > { %p29_p0 = scmp.ge.s32.totalorder %s28_s19, 3  ;;  %p644_p1 = scmp.ge.s32.totalorder %s810_s18, 1 }
   0x6   : > { %p200_p2 = scmp.lt.s32.totalorder %s810_s18, 73  ;;  %s39_s21 = sadd.s32 1, %s806_s17 }
   0x7   : > { %s957_s19 = smov (%p29_p0, %s28_s19), 0  ;;  %s959_s20 = smov (!%p29_p0, %s35_s20), %s802_s16 }
   0x8   : > { %p201_p3 = pnand %p644_p1, %p200_p2  ;;  %p37_p4 = scmp.ge.s32.totalorder %s959_s20, 12 }
   0x9   : > { %s247_s22 = sadd.s32 (!%p201_p3), %s786_s12, %s790_s13  ;;  %p248_p6 = scmp.lt.s32.totalorder (!%p201_p3), %s794_s14, 1 }
   0xa   : > { %s961_s20 = smov (%p37_p4, %s959_s20), 0  ;;  %s963_s21 = smov (!%p37_p4, %s39_s21), %s806_s17 }
   0xb   : > { %p41_p5 = scmp.ge.s32.totalorder %s963_s21, 2  ;;  %204 = sbr.rel (%p201_p3) target bundleno = 283 (0x11b), region = 32 }
   0xc   : > { %p250_p7 = scmp.lt.s32.totalorder (!%p201_p3), %s247_s22, 13  ;;  %p258_p8 = scmp.lt.s32.totalorder (!%p201_p3), %s786_s12, 2 }
   0xd   : > { %s965_s21 = smov (%p41_p5, %s963_s21), 0  ;;  %p271_p9 = scmp.lt.s32.totalorder (!%p201_p3), %s790_s13, 11 }
   0xe   : > { %p650_p10 = scmp.ne.s32.totalorder (!%p201_p3), %s786_s12, 0 }
  0x12   : > { %s967_s14 = smov (!%p248_p6, %s794_s14), 1  ;;  %s969_s22 = smov (!%p250_p7, %s247_s22), 13 }
  0x13   : > { %s691_s23 = smul.u32 28, %s967_s14  ;;  %s645_s24 = sshll.u32 %s969_s22, 1  ;;  %v812_v0 = vmov (!%p650_p10), 0.0  }
  0x14   : > { %s693_s30 = smul.u32 24, %s967_s14  ;;  %s971_s13 = smov (!%p271_p9, %s790_s13), 11  ;;  %286 = vst [vmem:[#allocation2] sm:$0xff] (!%p650_p10), %v812_v0  ;;  %287 = vst [vmem:[#allocation2 + $0x8] sm:$0xf] (!%p650_p10), %v812_v0 }
  0x15   : > { %s254_s25 = sadd.s32 %s691_s23, %s645_s24  ;;  %s648_s6 = sshll.u32 %s971_s13, 1 }
  0x16   : > { %s646_s26 = sshll.u32 %s254_s25, 2  ;;  %s278_s10 = sadd.s32 %s693_s30, %s648_s6 }
  0x17   : > { %s888_s29 = scalar_lea.vmem %s946_s0, %s646_s26  ;;  %s649_s11 = sshll.u32 %s278_s10, 2 }
  0x18   : > { %s259_s4 = scalar_select %p258_p8, %s786_s12, 2 }
  0x19   : > { %s900_s24 = scalar_lea.vmem %s949_s3, %s649_s11  ;;  %285 = sbr.rel (%p650_p10) target bundleno = 32 (0x20), region = 36 }
  0x1a   : > { %s692_s5 = smul.u32 6, %s259_s4 }
  0x1c   : > { %s895_s9 = scalar_lea.vmem %s947_s1, %s692_s5 }
  0x20 PF: > { %v651_v1 = vld [vmem:[%s895_s9 + $0x2] sm:$0x3]  ;;  %vm310_vm0 = vcmask 1041408   ;;  %v290_v2 = vld [vmem:[%s895_s9] sm:$0x3]  ;;  %v813_v3 = vmov 0.0  }
  0x21   : > { %673 = vmatprep.subr.bf16.mxu0 %v813_v3  ;;  %v312_v4 = vsel %vm310_vm0, %v651_v1, 0  ;;  %679 = vmatprep.subr.bf16.mxu1 %v813_v3  ;;  %v362_v5 = vsel %vm310_vm0, %v290_v2, 0  ;;  %v288_v6 = vld [vmem:[%s888_s29] sm:$0xf]  ;;  %v291_v7 = vld [vmem:[%s888_s29 + $0x4] sm:$0x7] }
  0x22   : > { %674 = vmatpush3.bf16.msra.mxu0 %v312_v4  ;;  %680 = vmatpush3.bf16.msra.mxu1 %v362_v5  ;;  %vm306_vm1 = vcmask 31744   ;;  %v289_v8 = vld [vmem:[%s888_s29 + $0x4] sm:$0x3]  ;;  %vm814_vm2 = vmmov 0   ;;  %v652_v9 = vcombine.low %v288_v6, %v291_v7  ;;  %v405_v15 = vld [vmem:[%s888_s29] sm:$0xe] }
  0x23   : > { %675 = vmatprep.mubr.msk.bf16.mxu0 %vm814_vm2, %v813_v3  ;;  %681 = vmatprep.mubr.msk.bf16.mxu1 %vm814_vm2, %v813_v3  ;;  %v654_v10 = vcombine.low %v288_v6, %v289_v8  ;;  %v656_v13 = vld [vmem:[%s895_s9 + $0x4] sm:$0x3]  ;;  %v657_v18 = vcombine.low %v405_v15, %v291_v7  ;;  %v462_v35 = vld [vmem:[#allocation2 + $0x8] sm:$0xf]  ;;  %p659_p11 = scmp.ne.s32.totalorder %s786_s12, 2 }
  0x24   : > { %685 = vmatprep.subr.bf16.mxu0 %v813_v3  ;;  %v300_v11 = vshrl.u32 %v652_v9, 16  ;;  %v302_v12 = vshll.u32 %v652_v9, 16  ;;  %v416_v17 = vsel %vm310_vm0, %v656_v13, 0  ;;  %v461_v31 = vld [vmem:[#allocation2] sm:$0xff] }
  0x25   : > { %682 = vmatmul.mubr.msk.bf16.vlgmr.msra.gmra.mrb[0].mxu1 %vm306_vm1, %v654_v10  ;;  %v411_v19 = vrot.slane %v657_v18, 1  ;;  %v660_v41 = vld [vmem:[%s948_s2] ss:$0 sm:$0xff] (!%p659_p11) }
  0x26   : > { %v304_v14 = vrot.slane %v302_v12, 1 }
  0x28   : > { %v305_v16 = vor.u32 %v304_v14, %v300_v11 }
  0x2a   : > { %676 = vmatmul.mubr.msk.bf16.vlgmr.msra.gmra.mrb[0].mxu0 %vm306_vm1, %v305_v16 }
  0x2b   : > { %686 = vmatpush3.bf16.msra.mxu0 %v416_v17  ;;  %687 = vmatprep.mubr.msk.bf16.mxu0 %vm814_vm2, %v813_v3 }
  0x32   : > { %688 = vmatmul.mubr.msk.bf16.vlgmr.msra.gmra.mrb[4].mxu0 %vm306_vm1, %v411_v19 }
  0xf8   : > { %v398_v20 = vpop.f32.mrb[0].mxu1 }
  0xf9   : > { %v683_v21 = vpop.f32.mrb[1].mxu1 }
  0xfa   : > { %v401_v22 = vpop.f32.mrb[2].mxu1 }
  0xfb   : > { %v684_v23 = vpop.f32.mrb[3].mxu1 }
  0xfd   : > { %v348_v24 = vpop.f32.mrb[0].mxu0 }
  0xfe   : > { %v399_v25 = vadd.f32 %v398_v20, %v348_v24  ;;  %v677_v26 = vpop.f32.mrb[1].mxu0 }
  0xff   : > { %v351_v27 = vpop.f32.mrb[2].mxu0 }
 0x100   : > { %v402_v28 = vadd.f32 %v401_v22, %v351_v27  ;;  %v678_v29 = vpop.f32.mrb[3].mxu0 }
 0x105   : > { %v452_v30 = vpop.f32.mrb[4].mxu0 }
 0x106   : > { %v459_v32 = vadd.f32 %v452_v30, %v399_v25  ;;  %v689_v33 = vpop.f32.mrb[5].mxu0  ;;  %470 = sbr.rel (%p659_p11) target bundleno = 283 (0x11b), region = 40 }
 0x107   : > { %v455_v34 = vpop.f32.mrb[6].mxu0 }
 0x108   : > { %v463_v36 = vadd.f32 %v461_v31, %v459_v32  ;;  %v460_v37 = vadd.f32 %v455_v34, %v402_v28  ;;  %v690_v38 = vpop.f32.mrb[7].mxu0 }
 0x10a   : > { %465 = vst [vmem:[#allocation2] sm:$0xff] %v463_v36  ;;  %v464_v39 = vadd.f32 %v462_v35, %v460_v37 }
 0x10c   : > { %466 = vst [vmem:[#allocation2 + $0x8] sm:$0xf] %v464_v39 }
 0x111   : > { %v471_v40 = vld [vmem:[#allocation2] sm:$0xff] }
 0x112   : > { %v480_v43 = vadd.f32 %v660_v41, %v471_v40 }
 0x113   : > { %v472_v42 = vld [vmem:[#allocation2 + $0x8] sm:$0xf] }
 0x114   : > { %v481_v44 = vadd.f32 %v660_v41, %v472_v42  ;;  %v482_v45 = vmax.f32 %v480_v43, 0.0 }
 0x116   : > { %v483_v46 = vmax.f32 %v481_v44, 0.0  ;;  %v665_v47 = vpack.c.bf16 %v482_v45, %v482_v45 }
 0x118   : > { %v666_v48 = vpack.c.bf16 %v483_v46, %v483_v46  ;;  %492 = vst [vmem:[%s900_s24] sm:$0xf] %v665_v47 }
 0x11a   : > { %493 = vst [vmem:[%s900_s24 + $0x4] sm:$0x3] %v666_v48 }
 0x11b PF: > { %s13_s18 = sadd.s32 1, %s810_s18   ;;  %s950_s12 = smov %s798_s15 }
 0x11c   : > { %p10_p12 = scmp.ge.s32.totalorder %s13_s18, 74   ;;  %s951_s13 = smov %s802_s16 }
 0x11d   : > { %s952_s14 = smov %s806_s17  ;;  %s953_s15 = smov %s957_s19 }
 0x11e   : > { %s954_s16 = smov %s961_s20  ;;  %s955_s17 = smov %s965_s21 }
 0x11f   :  { %12 = sbr.rel (!%p10_p12) target bundleno = 4 (0x4), region = 78 }

</bundles_post_ra>
